<compile_context>
chip_gen: v7x
topology: tpu7x:2x2x1
jax: 0.10.0
libtpu: 0.0.40
codegen_flags: <defaults>
</compile_context>

<pallas_src>
import math

import jax
import jax.numpy as jnp
import numpy as np
from jax.experimental import pallas as pl
from jax.experimental.pallas import tpu as pltpu


def edge_censnet_kernel(node_ref, edge_ref, adj_ref, deg_ref, t_ref,
                        ew_ref, nw_ref, out_ref):
    bb, n, fn = node_ref.shape            # graphs per grid step (static)
    e = adj_ref.shape[-1]
    fin = edge_ref.shape[-1]
    fout = ew_ref.shape[-1]

    ew = ew_ref[...]                      # (Fin, Fout)  edge_weight (f32)
    nw = nw_ref[...]                      # (1, Fn)      node_weight row (f32)

    # Identity mask built once per grid step (shared by all bb graphs).
    rows = jax.lax.broadcasted_iota(jnp.int32, (e, e), 0)
    cols = jax.lax.broadcasted_iota(jnp.int32, (e, e), 1)
    eye = (rows == cols).astype(jnp.float32)

    # Masked 1/sqrt(deg): EUP rsqrt + one select (D is diagonal).
    deg = deg_ref[...]                    # (bb, 1, E) f32
    nz = deg != 0.0
    dinv = jnp.where(nz, jax.lax.rsqrt(jnp.where(nz, deg, 1.0)), 0.0)

    # Upcast the bf16 binary streams once for the whole block.
    adj = adj_ref[...].astype(jnp.float32)      # (bb, E, E)
    t = t_ref[...].astype(jnp.float32)          # (bb, N, E)
    node = node_ref[...]                        # (bb, N, Fn) f32
    edge = edge_ref[...]                        # (bb, E, Fin) f32

    # A_tilde = (adj + I) @ diag(1/sqrt(deg))  == column scaling (VPU only).
    a_tilde = (adj + eye[None]) * dinv                               # (bb, E, E)

    # HvPv = node @ node_weight (vector weight -> VPU mul + one lane reduce),
    # hoisted: computed once for the whole block.
    hvpv = jnp.sum(node * nw, axis=-1, keepdims=True)                # (bb, N, 1)

    # S = T^T @ diag(HvPv) @ T == (T * HvPv)^T @ T, batched, contracting over N
    # directly (no explicit transpose through the XLU).
    tw = t * hvpv                                                    # (bb, N, E)
    s = jax.lax.dot_general(tw, t, (((1,), (1,)), ((0,), (0,))),
                            preferred_element_type=jnp.float32)      # (bb, E, E)

    m = s * a_tilde                                                  # (bb, E, E)

    # Reassociated and batched: (M @ edge) @ W  ->  M @ (edge @ W), with
    # edge @ W issued as a single (bb*E, Fin) x (Fin, Fout) MXU dot.
    edgew = jnp.dot(edge.reshape(bb * e, fin), ew,
                    preferred_element_type=jnp.float32).reshape(bb, e, fout)
    out = jax.lax.dot_general(m, edgew, (((2,), (1,)), ((0,), (0,))),
                              preferred_element_type=jnp.float32)    # (bb, E, Fout)

    # Lane-dense store: pack the bb graphs along the lane axis -> (E, bb*Fout)
    # and store the whole slab once per grid step.
    packed = jnp.concatenate([out[b] for b in range(bb)], axis=-1)   # (E, bb*Fout)
    out_ref[0] = packed.astype(out_ref.dtype)


def _block_vmem_bytes(bb, N, E, Fn, Fin, Fout):
    """Rough double-buffered VMEM footprint of one grid step (bytes)."""
    f32, bf16 = 4, 2
    in_blocks = (bb * N * Fn * f32          # node
                 + bb * E * Fin * f32       # edge
                 + bb * E * E * bf16        # adj (bf16)
                 + bb * E * f32             # degree vector
                 + bb * N * E * bf16        # T (bf16)
                 + Fin * Fout * f32 + Fn * f32)
    out_block = bb * E * Fout * f32
    # f32 intermediates (adj/T upcasts, a_tilde, s, m, tw, edgew).
    interm = bb * (3 * E * E + 2 * N * E + E * Fout) * f32
    return 2 * (in_blocks + out_block) + interm


def edge_censnet(node, edge, edge_adj, D, T, edge_weight, node_weight,
                 *, degree=None, batch_block=None):
    """EdgeCensNet forward.

    node      : (B, N, node_features)
    edge      : (B, E, in_features)
    edge_adj  : (B, E, E)  binary adjacency (no self loops; forward adds I)
    D         : (B, E, E)  diagonal degree matrix (only its diagonal is used);
                may be None if `degree` (B, E) is given directly.
    T         : (B, N, E)  binary incidence matrix
    edge_weight : (in_features, out_features)
    node_weight : (node_features,)
    returns   : (B, E, out_features) float32
    """
    B, N, Fn = node.shape
    _, E, Fin = edge.shape
    Fout = edge_weight.shape[1]

    # Degree vector only (D is diagonal by construction) -> drops one (B,E,E)
    # HBM stream and the dense matmul against diag(D).
    if degree is None:
        degree = jnp.diagonal(D, axis1=1, axis2=2)
    deg = degree.reshape(B, 1, E).astype(jnp.float32)
    nw_row = node_weight.reshape(1, Fn).astype(jnp.float32)

    # Binary 0/1 matrices are exact in bf16 -> halve the dominant HBM streams.
    adj_bf16 = edge_adj.astype(jnp.bfloat16)
    t_bf16 = T.astype(jnp.bfloat16)

    if batch_block is None:
        # Keep >= 2 grid steps when possible so both v7x TensorCores get work;
        # on v5e/v6e (single TC) the extra grid step is negligible at these sizes.
        target = max(1, B // 2)
        bb = max(d for d in range(1, target + 1) if B % d == 0)
    else:
        bb = batch_block
    assert B % bb == 0, "batch_block must divide the batch size"
    g = B // bb

    # Explicit VMEM cap derived from the block footprint; stay well under
    # v7x's 64 MiB physical VMEM while raising the 16/32 MiB default scope
    # when large blocks are requested.
    est = _block_vmem_bytes(bb, N, E, Fn, Fin, Fout)
    vmem_limit = int(min(48 * 2**20, max(16 * 2**20, 2 * est)))

    packed = pl.pallas_call(
        edge_censnet_kernel,
        out_shape=jax.ShapeDtypeStruct((g, E, bb * Fout), jnp.float32),
        grid_spec=pltpu.PrefetchScalarGridSpec(
            num_scalar_prefetch=0,
            grid=(g,),
            in_specs=[
                pl.BlockSpec((bb, N, Fn), lambda i: (i, 0, 0)),   # node  (f32)
                pl.BlockSpec((bb, E, Fin), lambda i: (i, 0, 0)),  # edge  (f32)
                pl.BlockSpec((bb, E, E), lambda i: (i, 0, 0)),    # adj   (bf16)
                pl.BlockSpec((bb, 1, E), lambda i: (i, 0, 0)),    # degree (f32)
                pl.BlockSpec((bb, N, E), lambda i: (i, 0, 0)),    # T     (bf16)
                pl.BlockSpec((Fin, Fout), lambda i: (0, 0)),      # edge_weight
                pl.BlockSpec((1, Fn), lambda i: (0, 0)),          # node_weight
            ],
            out_specs=pl.BlockSpec((1, E, bb * Fout), lambda i: (i, 0, 0)),
        ),
        compiler_params=pltpu.CompilerParams(
            dimension_semantics=("parallel",),
            vmem_limit_bytes=vmem_limit),
    )(node, edge, adj_bf16, deg, t_bf16, edge_weight, nw_row)

    # Unpack the lane-dense slab: (g, E, bb*Fout) -> (B, E, Fout).
    out = packed.reshape(g, E, bb, Fout)
    out = jnp.transpose(out, (0, 2, 1, 3)).reshape(B, E, Fout)
    return out


def edge_censnet_ref(node, edge, edge_adj, D, T, edge_weight, node_weight):
    """Pure-JAX reference mirroring the PyTorch forward exactly (in f32)."""
    d_sqrt = jnp.sqrt(D)
    d_inv = jnp.where(d_sqrt != 0, 1.0 / jnp.where(d_sqrt != 0, d_sqrt, 1.0), 0.0)
    e = edge_adj.shape[2]
    adj_i = edge_adj + jnp.eye(e, dtype=edge_adj.dtype)[None]
    a_tilde = jnp.matmul(adj_i, d_inv)                          # second bmm survives
    hvpv = jnp.matmul(node, node_weight)                        # (B, N)
    fi = jax.vmap(jnp.diag)(hvpv)                               # (B, N, N)
    out = jnp.matmul(jnp.swapaxes(T, 1, 2), fi)                 # (B, E, N)
    out = jnp.matmul(out, T)                                    # (B, E, E)
    out = out * a_tilde
    out = jnp.matmul(out, edge)                                 # (B, E, Fin)
    out = jnp.matmul(out, edge_weight)                          # (B, E, Fout)
    return out


if __name__ == "__main__":
    B, N, E = 2, 16, 8
    in_features, out_features, node_features = 16, 8, 4

    key = jax.random.PRNGKey(0)
    k_node, k_edge, k_adj, k_t, k_ew, k_nw = jax.random.split(key, 6)

    node = jax.random.normal(k_node, (B, N, node_features), dtype=jnp.float32)
    edge = jax.random.normal(k_edge, (B, E, in_features), dtype=jnp.float32)

    # Random symmetric binary edge-adjacency, no self-loops (forward adds I).
    a = (jax.random.uniform(k_adj, (B, E, E)) > 0.6).astype(jnp.float32)
    edge_adj = jnp.clip(a + jnp.swapaxes(a, 1, 2), 0.0, 1.0)
    edge_adj = edge_adj * (1.0 - jnp.eye(E, dtype=jnp.float32)[None])

    # Diagonal degree matrix.
    deg = jnp.sum(edge_adj, axis=-1) + 1.0                      # (B, E)
    D = jax.vmap(jnp.diag)(deg)                                 # (B, E, E)

    # Random binary incidence-like matrix.
    T = (jax.random.uniform(k_t, (B, N, E)) > 0.5).astype(jnp.float32)

    # Parameter init matching reset_parameters().
    stdv_e = 1.0 / math.sqrt(out_features)
    edge_weight = jax.random.uniform(
        k_ew, (in_features, out_features), minval=-stdv_e, maxval=stdv_e,
        dtype=jnp.float32)
    stdv_n = 1.0 / math.sqrt(node_features)
    node_weight = jax.random.uniform(
        k_nw, (node_features,), minval=-stdv_n, maxval=stdv_n, dtype=jnp.float32)

    out = edge_censnet(node, edge, edge_adj, D, T, edge_weight, node_weight)
    out = jax.block_until_ready(out)

    ref = edge_censnet_ref(node, edge, edge_adj, D, T, edge_weight, node_weight)
    np.testing.assert_allclose(np.asarray(out), np.asarray(ref),
                               rtol=1e-4, atol=1e-4)

    print("KERNEL_OK")
</pallas_src>

<mosaic_0001>
module attributes {stable_mosaic.version = 11 : i64} {
  func.func @edge_censnet_kernel(%arg0: i32, %arg1: memref<1x16x4xf32, #tpu.memory_space<vmem>>, %arg2: memref<1x8x16xf32, #tpu.memory_space<vmem>>, %arg3: memref<1x8x8xbf16, #tpu.memory_space<vmem>>, %arg4: memref<1x1x8xf32, #tpu.memory_space<vmem>>, %arg5: memref<1x16x8xbf16, #tpu.memory_space<vmem>>, %arg6: memref<16x8xf32, #tpu.memory_space<vmem>>, %arg7: memref<1x4xf32, #tpu.memory_space<vmem>>, %arg8: memref<1x8x8xf32, #tpu.memory_space<vmem>>) attributes {dimension_semantics = [#tpu.dimension_semantics<parallel>], iteration_bounds = array<i64: 2>, scalar_prefetch = 0 : i64, scratch_operands = 0 : i64, tpu.core_type = #tpu.core_type<tc>, window_params = [{transform_indices = @transform_0, window_bounds = array<i64: 1, 16, 4>}, {transform_indices = @transform_1, window_bounds = array<i64: 1, 8, 16>}, {transform_indices = @transform_2, window_bounds = array<i64: 1, 8, 8>}, {transform_indices = @transform_3, window_bounds = array<i64: 1, 1, 8>}, {transform_indices = @transform_4, window_bounds = array<i64: 1, 16, 8>}, {pipeline_mode = #tpu.pipeline_mode<synchronous>, transform_indices = @transform_5, window_bounds = array<i64: 16, 8>}, {pipeline_mode = #tpu.pipeline_mode<synchronous>, transform_indices = @transform_6, window_bounds = array<i64: 1, 4>}, {transform_indices = @transform_7, window_bounds = array<i64: 1, 8, 8>}]} {
    %c0 = arith.constant 0 : index
    %c0_0 = arith.constant 0 : index
    %0 = vector.load %arg6[%c0, %c0_0] : memref<16x8xf32, #tpu.memory_space<vmem>>, vector<16x8xf32>
    %c0_1 = arith.constant 0 : index
    %c0_2 = arith.constant 0 : index
    %1 = vector.load %arg7[%c0_1, %c0_2] : memref<1x4xf32, #tpu.memory_space<vmem>>, vector<1x4xf32>
    %2 = tpu.iota {dimensions = array<i32: 0>} : vector<8x8xi32>
    %3 = tpu.iota {dimensions = array<i32: 1>} : vector<8x8xi32>
    %4 = arith.cmpi eq, %2, %3 : vector<8x8xi32>
    %5 = arith.extui %4 : vector<8x8xi1> to vector<8x8xi32>
    %6 = arith.sitofp %5 : vector<8x8xi32> to vector<8x8xf32>
    %c0_3 = arith.constant 0 : index
    %c0_4 = arith.constant 0 : index
    %c0_5 = arith.constant 0 : index
    %7 = vector.load %arg4[%c0_3, %c0_4, %c0_5] : memref<1x1x8xf32, #tpu.memory_space<vmem>>, vector<1x1x8xf32>
    %cst = arith.constant 0.000000e+00 : f32
    %8 = vector.broadcast %cst : f32 to vector<1x1x8xf32>
    %9 = arith.cmpf one, %7, %8 : vector<1x1x8xf32>
    %cst_6 = arith.constant 1.000000e+00 : f32
    %10 = vector.broadcast %cst_6 : f32 to vector<1x1x8xf32>
    %11 = arith.select %9, %7, %10 : vector<1x1x8xi1>, vector<1x1x8xf32>
    %12 = math.rsqrt %11 : vector<1x1x8xf32>
    %cst_7 = arith.constant 0.000000e+00 : f32
    %13 = vector.broadcast %cst_7 : f32 to vector<1x1x8xf32>
    %14 = arith.select %9, %12, %13 : vector<1x1x8xi1>, vector<1x1x8xf32>
    %c0_8 = arith.constant 0 : index
    %c0_9 = arith.constant 0 : index
    %c0_10 = arith.constant 0 : index
    %15 = vector.load %arg3[%c0_8, %c0_9, %c0_10] : memref<1x8x8xbf16, #tpu.memory_space<vmem>>, vector<1x8x8xbf16>
    %16 = arith.extf %15 : vector<1x8x8xbf16> to vector<1x8x8xf32>
    %c0_11 = arith.constant 0 : index
    %c0_12 = arith.constant 0 : index
    %c0_13 = arith.constant 0 : index
    %17 = vector.load %arg5[%c0_11, %c0_12, %c0_13] : memref<1x16x8xbf16, #tpu.memory_space<vmem>>, vector<1x16x8xbf16>
    %18 = arith.extf %17 : vector<1x16x8xbf16> to vector<1x16x8xf32>
    %c0_14 = arith.constant 0 : index
    %c0_15 = arith.constant 0 : index
    %c0_16 = arith.constant 0 : index
    %19 = vector.load %arg1[%c0_14, %c0_15, %c0_16] : memref<1x16x4xf32, #tpu.memory_space<vmem>>, vector<1x16x4xf32>
    %c0_17 = arith.constant 0 : index
    %c0_18 = arith.constant 0 : index
    %c0_19 = arith.constant 0 : index
    %20 = vector.load %arg2[%c0_17, %c0_18, %c0_19] : memref<1x8x16xf32, #tpu.memory_space<vmem>>, vector<1x8x16xf32>
    %21 = vector.shape_cast %6 : vector<8x8xf32> to vector<1x8x8xf32>
    %22 = arith.addf %16, %21 : vector<1x8x8xf32>
    %23 = vector.broadcast %14 : vector<1x1x8xf32> to vector<1x8x8xf32>
    %24 = arith.mulf %22, %23 : vector<1x8x8xf32>
    %25 = vector.shape_cast %1 : vector<1x4xf32> to vector<1x1x4xf32>
    %26 = vector.broadcast %25 : vector<1x1x4xf32> to vector<1x16x4xf32>
    %27 = arith.mulf %19, %26 : vector<1x16x4xf32>
    %cst_20 = arith.constant dense<0.000000e+00> : vector<1x16xf32>
    %28 = vector.multi_reduction <add>, %27, %cst_20 [2] : vector<1x16x4xf32> to vector<1x16xf32>
    %29 = vector.shape_cast %28 : vector<1x16xf32> to vector<1x16x1xf32>
    %30 = vector.broadcast %29 : vector<1x16x1xf32> to vector<1x16x8xf32>
    %31 = arith.mulf %18, %30 : vector<1x16x8xf32>
    %cst_21 = arith.constant dense<0.000000e+00> : vector<1x8x8xf32>
    %32 = tpu.matmul %31, %18, %cst_21 {dimension_numbers = #tpu.dot_dimension_numbers<[1], [1], [2], [2], [0, 0, 0, 2, 1, 2], [0], [0]>} : vector<1x16x8xf32>, vector<1x16x8xf32>, vector<1x8x8xf32> -> vector<1x8x8xf32>
    %33 = arith.mulf %32, %24 : vector<1x8x8xf32>
    %34 = vector.shape_cast %20 : vector<1x8x16xf32> to vector<8x16xf32>
    %cst_22 = arith.constant dense<0.000000e+00> : vector<8x8xf32>
    %35 = tpu.matmul %34, %0, %cst_22 {dimension_numbers = #tpu.dot_dimension_numbers<[1], [0], [0], [1], [0, 0, 1, 1], [], []>} : vector<8x16xf32>, vector<16x8xf32>, vector<8x8xf32> -> vector<8x8xf32>
    %36 = vector.shape_cast %35 : vector<8x8xf32> to vector<1x8x8xf32>
    %cst_23 = arith.constant dense<0.000000e+00> : vector<1x8x8xf32>
    %37 = tpu.matmul %33, %36, %cst_23 {dimension_numbers = #tpu.dot_dimension_numbers<[2], [1], [1], [2], [0, 0, 0, 1, 1, 2], [0], [0]>} : vector<1x8x8xf32>, vector<1x8x8xf32>, vector<1x8x8xf32> -> vector<1x8x8xf32>
    %38 = vector.shape_cast %37 : vector<1x8x8xf32> to vector<8x8xf32>
    %c0_24 = arith.constant 0 : index
    %c0_25 = arith.constant 0 : index
    %c0_26 = arith.constant 0 : index
    %39 = vector.load %arg8[%c0_24, %c0_25, %c0_26] : memref<1x8x8xf32, #tpu.memory_space<vmem>>, vector<1x8x8xf32>
    %40 = vector.shape_cast %39 : vector<1x8x8xf32> to vector<8x8xf32>
    %41 = vector.shape_cast %38 : vector<8x8xf32> to vector<1x8x8xf32>
    tpu.vector_store %arg8[%c0_24, %c0_25, %c0_26], %41 {strides = array<i32>} : memref<1x8x8xf32, #tpu.memory_space<vmem>>, vector<1x8x8xf32>,
    return
  }
  func.func @transform_0(%arg0: i32) -> (i32, i32, i32) {
    %c0_i32 = arith.constant 0 : i32
    %c0_i32_0 = arith.constant 0 : i32
    %c0_i32_1 = arith.constant 0 : i32
    return %arg0, %c0_i32, %c0_i32_0 : i32, i32, i32
  }
  func.func @transform_1(%arg0: i32) -> (i32, i32, i32) {
    %c0_i32 = arith.constant 0 : i32
    %c0_i32_0 = arith.constant 0 : i32
    %c0_i32_1 = arith.constant 0 : i32
    return %arg0, %c0_i32, %c0_i32_0 : i32, i32, i32
  }
  func.func @transform_2(%arg0: i32) -> (i32, i32, i32) {
    %c0_i32 = arith.constant 0 : i32
    %c0_i32_0 = arith.constant 0 : i32
    %c0_i32_1 = arith.constant 0 : i32
    return %arg0, %c0_i32, %c0_i32_0 : i32, i32, i32
  }
  func.func @transform_3(%arg0: i32) -> (i32, i32, i32) {
    %c0_i32 = arith.constant 0 : i32
    %c0_i32_0 = arith.constant 0 : i32
    %c0_i32_1 = arith.constant 0 : i32
    return %arg0, %c0_i32, %c0_i32_0 : i32, i32, i32
  }
  func.func @transform_4(%arg0: i32) -> (i32, i32, i32) {
    %c0_i32 = arith.constant 0 : i32
    %c0_i32_0 = arith.constant 0 : i32
    %c0_i32_1 = arith.constant 0 : i32
    return %arg0, %c0_i32, %c0_i32_0 : i32, i32, i32
  }
  func.func @transform_5(%arg0: i32) -> (i32, i32) {
    %c0_i32 = arith.constant 0 : i32
    %c0_i32_0 = arith.constant 0 : i32
    %c0_i32_1 = arith.constant 0 : i32
    return %c0_i32, %c0_i32_0 : i32, i32
  }
  func.func @transform_6(%arg0: i32) -> (i32, i32) {
    %c0_i32 = arith.constant 0 : i32
    %c0_i32_0 = arith.constant 0 : i32
    %c0_i32_1 = arith.constant 0 : i32
    return %c0_i32, %c0_i32_0 : i32, i32
  }
  func.func @transform_7(%arg0: i32) -> (i32, i32, i32) {
    %c0_i32 = arith.constant 0 : i32
    %c0_i32_0 = arith.constant 0 : i32
    %c0_i32_1 = arith.constant 0 : i32
    return %arg0, %c0_i32, %c0_i32_0 : i32, i32, i32
  }
}

</mosaic_0001>

<bundles_post_ra>
// kernel: tpu_custom_call.1
= control target key start
LH: loop header
LB: loop body
LE: loop exit
PB: predicated region body
PF: predicated region fallthrough
CT: control target
= control target key end

     0   :  { %12 = vsyncpa [#allocation3], 0  ;;  %s1108_s0 = inlined_call_operand.vmem [shape: f32[2,16,4], index: 0, kind: input, shape index: {}]   ;;  %s1109_s1 = inlined_call_operand.vmem [shape: f32[2,8,16], index: 1, kind: input, shape index: {}]   ;;  %s1110_s2 = inlined_call_operand.vmem [shape: bf16[2,8,8], index: 2, kind: input, shape index: {}]   ;;  %s1111_s3 = inlined_call_operand.vmem [shape: f32[2,1,8], index: 3, kind: input, shape index: {}]   ;;  %s1112_s4 = inlined_call_operand.vmem [shape: bf16[2,16,8], index: 4, kind: input, shape index: {}]   ;;  %s1113_s5 = inlined_call_operand.vmem [shape: f32[16,8], index: 5, kind: input, shape index: {}]   ;;  %s1114_s6 = inlined_call_operand.vmem [shape: f32[1,4], index: 6, kind: input, shape index: {}]   ;;  %s1115_s7 = inlined_call_operand.hbm [shape: f32[2,8,8], index: 7, kind: output, shape index: {}]  }
   0x1   :  { %14 = vsyncpa [#allocation3 + $0x1], 0  ;;  %s978_s24 = smov 0   ;;  %s980_s25 = smov 0  }
   0x2   :  { %s982_s26 = smov 0   ;;  %s984_s27 = smov 0  }
   0x3 LB: > { %s999_s28 = sadd.s32 4294967295, %s932_s27   ;;  %s767_s29 = sadd.s32 4294967294, %s932_s27   ;;  %s932_s27 = sphi %s984_s27, %s1121_s27   ;;  %s928_s26 = sphi %s982_s26, %s1120_s26   ;;  %s924_s25 = sphi %s980_s25, %s1119_s25   ;;  %s920_s24 = sphi %s978_s24, %s1118_s24  }
   0x4   : > { %s1003_s30 = sadd.s32 1, %s932_s27   ;;  %s199_s8 = sadd.s32 1, %s928_s26 }
   0x5   : > { %s196_s9 = ssub.s32 %s932_s27, %s1003_s30  ;;  %p209_p0 = scmp.ne.s32.totalorder %s928_s26, %s924_s25 }
   0x6   : > { %p197_p1 = scmp.eq.s32.totalorder %s196_s9, 0  ;;  %p210_p2 = scmp.eq.s32.totalorder %s999_s28, 1 }
   0x7   : > { %p215_p3 = scmp.ne.s32.totalorder %s924_s25, %s920_s24  ;;  %p216_p4 = scmp.eq.s32.totalorder %s767_s29, 1 }
   0x8   : > { %s1014_s10 = scalar_select %p197_p1, %s928_s26, %s199_s8  }
   0x9   : > { %p1016_p5 = por %p210_p2, %p209_p0  ;;  %p1020_p6 = por %p216_p4, %p215_p3 }
   0xa   : > { %p770_p7 = scmp.ge.s32.totalorder %s932_s27, 1  ;;  %p276_p8 = scmp.lt.s32.totalorder %s932_s27, 3 }
   0xc   : > { %p277_p9 = pnand %p770_p7, %p276_p8 }
   0xd   : > { %p324_p10 = scmp.lt.s32.totalorder (!%p277_p9), %s999_s28, 1  ;;  %v779_v0 = vld [vmem:[%s1114_s6] ss:$0 sm:$0xff] (!%p277_p9)  ;;  %vm385_vm0 = vcmask (!%p277_p9), 31744   ;;  %v346_v8 = vld [vmem:[%s1113_s5 + $0x8] sm:$0xff] (!%p277_p9)  ;;  %v934_v10 = vmov (!%p277_p9), 0.0|0.0   ;;  %v348_v25 = vlaneseq (!%p277_p9) }
   0xe   : > { %280 = sbr.rel (%p277_p9) target bundleno = 742 (0x2e6), region = 48  ;;  %v345_v7 = vld [vmem:[%s1113_s5] sm:$0xff] (!%p277_p9)  ;;  %823 = vmatprep.subr.bf16.mxu1 (!%p277_p9), %v934_v10  ;;  %820 = vmatprep.subr.bf16.mxu0 (!%p277_p9), %v934_v10  ;;  %vm935_vm1 = vmmov (!%p277_p9), 0   ;;  %v936_v12 = vmov (!%p277_p9), 0.0   ;;  %vm426_vm2 = vcmask (!%p277_p9), 130048   ;;  %vm574_vm5 = vcmask (!%p277_p9), 64512  }
   0xf   : > { %v824_v11 = vpack.c.bf16 (!%p277_p9), %v346_v8, %v345_v7  ;;  %812 = vmatprep.mubr.msk.f32.mxu1 (!%p277_p9), %vm935_vm1, %v936_v12  ;;  %805 = vmatprep.mubr.msk.f32.mxu0 (!%p277_p9), %vm935_vm1, %v936_v12  ;;  %v349_v26 = vshrl.u32 (!%p277_p9), %v348_v25, 7  ;;  %v351_v27 = vand.u32 (!%p277_p9), 127, %v348_v25  ;;  %s784_s9 = sshll.u32 (!%p277_p9), %s999_s28, 7 }
  0x10   : > { %s1066_s18 = scalar_lea.hbm (!%p277_p9), %s1115_s7, %s784_s9 }
  0x11   : > { %825 = vmatpush3.bf16.msra.mxu1 (!%p277_p9), %v824_v11  ;;  %vm352_vm4 = vcmp.eq.s32.totalorder (!%p277_p9), %v349_v26, %v351_v27  ;;  %v373_v31 = vsub.s32 (!%p277_p9), 0, %v349_v26 }
  0x12   : > { %v778_v32 = vsel (!%p277_p9), %vm352_vm4, 1.0, %v936_v12 }
  0x15   : > { %s1028_s13 = scalar_select %p324_p10, %s999_s28, 1 }
  0x16   : > { %s937_s28 = smov [#allocation2]  }
  0x17   : > { %s787_s14 = sshll.u32 %s1028_s13, 4  ;;  %s774_s20 = sshll.u32 %s1028_s13, 3 }
  0x18   : > { %s328_s19 = scalar_lea.vmem %s1108_s0, %s787_s14  ;;  %s344_s23 = scalar_lea.vmem %s1112_s4, %s774_s20 }
  0x19   : > { %v366_v1 = vld [vmem:[%s328_s19] sm:$0xff]  ;;  %v367_v2 = vld [vmem:[%s328_s19 + $0x8] sm:$0xff]  ;;  %s332_s17 = scalar_lea.vmem %s1109_s1, %s774_s20  ;;  %s339_s20 = scalar_lea.vmem %s1111_s3, %s1028_s13 }
  0x1a   : > { %v383_v3 = vmul.f32 %v779_v0, %v366_v1  ;;  %v384_v4 = vmul.f32 %v779_v0, %v367_v2  ;;  %v790_v9 = vld [vmem:[%s344_s23] sm:$0xff]   ;;  %s775_s21 = sshll.u32 %s1028_s13, 2  ;;  %s321_s13 = sand.u32 1, %s924_s25  }
  0x1b   : > { %822 = vmatpush3.bf16.msra.mxu0 %v790_v9  ;;  %v368_v13 = vld [vmem:[%s332_s17] sm:$0xff]  ;;  %v791_v14 = vunpack.c.l.bf16 %v790_v9  ;;  %v792_v17 = vunpack.c.h.bf16 %v790_v9  ;;  %s336_s29 = scalar_lea.vmem %s1110_s2, %s775_s21  ;;  %s771_s8 = sshll.u32 %s321_s13, 3 }
  0x1c   : > { %v386_v5 = vsel %vm385_vm0, %v383_v3, 0.0  ;;  %v389_v6 = vsel %vm385_vm0, %v384_v4, 0.0  ;;  %815 = vmatprep.subr.mxu0 %v936_v12  ;;  %813 = vmatmul.mubr.msk.f32.vlgmr.msra.gmra.mrb[0].mxu1 %vm426_vm2, %v368_v13  ;;  %v355_v23 = vld [vmem:[%s339_s20] sm:$0x1]  ;;  %s323_s14 = scalar_lea.vmem [#allocation2], %s771_s8  ;;  %s650_s19 = scalar_lea.sflag [#allocation3], %s321_s13 }
  0x1d   : > { %387 = vadd.xlane.f32.xlu0 %v386_v5  ;;  %vm356_vm3 = vcmp.ne.f32.partialorder %v355_v23, 0.0  ;;  %v360_v28 = vld [vmem:[%s336_s29] sm:$0xf]  ;;  %s663_s15 = sshll.u32 %s323_s14, 4  ;;  %s874_s21 = sshll.u32 %s937_s28, 4  ;;  %s1068_s15 = int_to_ptr.vmem [resolvable:$true] %s663_s15  ;;  %s875_s21 = int_to_ptr.vmem [resolvable:$false] %s874_s21 }
  0x1e   : > { %v357_v24 = vsel %vm356_vm3, %v355_v23, 1.0  ;;  %v361_v30 = vunpack.c.l.bf16 %v360_v28  ;;  %s870_s20 = scalar_lea.vmem %s1068_s15, 128  ;;  %s876_s22 = scalar_lea.vmem %s875_s21, 256 }
  0x1f   : > { %868 = vrsqrt.f32 %v357_v24  ;;  %p871_p11 = scmp.ne.s32.totalorder %s1068_s15, %s870_s20  ;;  %p877_p0 = scmp.lt.s32.totalorder %s1068_s15, %s875_s21 }
  0x20   : > { %v369_v34 = vadd.f32 %v778_v32, %v361_v30  ;;  %p878_p1 = scmp.lt.s32.totalorder %s876_s22, %s870_s20 }
  0x21   : > { %390 = vadd.xlane.f32.xlu0 %v389_v6  ;;  %p872_p12 = pnand %p871_p11, %p1016_p5 }
  0x22   : > { %p879_p2 = por %p878_p1, %p877_p0 }
  0x23   : > { %p873_p13 = pneg %p872_p12 }
  0x25   : > { %p880_p3 = pnand %p879_p2, %p873_p13 }
  0x29   : > { %v869_v29 = vpop.eup %868 }
  0x2a   : > { %v359_v33 = vsel %vm356_vm3, %v869_v29, 0.0 }
  0x2b   : > { %v374_v35 = vrot.slane %v359_v33, %v373_v31 }
  0x2d   : > { %v376_v36 = vmul.f32 %v374_v35, %v369_v34 }
  0xaa   : > { %v388_v15 = vpop.xlane.xlu0 %387 }
  0xab   : > { %v392_v16 = vmul.f32 %v791_v14, %v388_v15 }
  0xad   : > { %394 = vxpose.xlu1.b32.start [1/2] (short) (narrow) %v392_v16, 8 }
  0xae   : > { %v391_v18 = vpop.xlane.xlu0 %390 }
  0xaf   : > { %v393_v19 = vmul.f32 %v792_v17, %v391_v18 }
  0xb1   : > { %395 = vxpose.xlu1.b32.end [2/2] (short) (narrow) %v393_v19, 8 }
  0xef   : > { %v570_v20 = vpop.f32.mrb[0].mxu1 }
  0xf0   : > { %v814_v21 = vpop.f32.mrb[1].mxu1 }
 0x12d   : > { %v410_v22 = vpop.trf.xlu1 }
 0x12e   : > { %806 = vmatmul.mubr.msk.f32.vlgmr.msra.gmra.mrb[0].mxu0 %vm426_vm2, %v410_v22 }
 0x12f   : > { %816 = vmatpush3.msra.mxu0 %v570_v20  ;;  %817 = vmatprep.mubr.msk.f32.mxu0 %vm935_vm1, %v936_v12 }
 0x201   : > { %v496_v37 = vpop.f32.mrb[0].mxu0 }
 0x202   : > { %v500_v38 = vmul.f32 %v496_v37, %v376_v36  ;;  %v807_v39 = vpop.f32.mrb[1].mxu0 }
 0x204   : > { %818 = vmatmul.mubr.msk.f32.vlgmr.msra.gmra.mrb[2].mxu0 %vm574_vm5, %v500_v38 }
 0x2d7   : > { %v644_v40 = vpop.f32.mrb[2].mxu0 }
 0x2d8   : > { %648 = vst.msk [vmem:[%s323_s14] sm:$0xff] %vm574_vm5, %v644_v40  ;;  %v819_v41 = vpop.f32.mrb[3].mxu0 }
 0x2d9   : > { %883 = shalt.err (!%p880_p3)
}
 0x2da   : > { %s884_s23 = scalar_lea.hbm %s1066_s18, 128  ;;  %s888_s8 = scalar_lea.hbm %s1115_s7, 256 }
 0x2db   : > { %p885_p4 = scmp.ne.s32.totalorder %s1066_s18, %s884_s23  ;;  %p889_p9 = scmp.lt.u32.totalorder %s1066_s18, %s1115_s7 }
 0x2dc   : > { %p890_p10 = scmp.lt.u32.totalorder %s888_s8, %s884_s23  ;;  %p892_p12 = scmp.lt.u32.totalorder %s884_s23, %s1066_s18 }
 0x2dd   : > { %p886_p7 = pnand %p885_p4, %p1016_p5 }
 0x2de   : > { %p891_p11 = por %p890_p10, %p889_p9 }
 0x2df   : > { %p887_p8 = pneg %p886_p7 }
 0x2e0   : > { %p893_p13 = por %p892_p12, %p891_p11 }
 0x2e2   : > { %p894_p0 = pnand %p893_p13, %p887_p8 }
 0x2e4   : > { %897 = shalt.err (!%p894_p0)
}
 0x2e5   : > { %826 = dma.vmem_to_hbm [thread:$0]  (%p1016_p5), %s1068_s15, 128, %s1066_s18, %s650_s19  }
 0x2e6 PF: > { %p832_p1 = scmp.ge.s32.totalorder %s932_s27, 2  ;;  %s675_s16 = sand.u32 1, %s920_s24  }
 0x2e7   : > { %s676_s17 = scalar_lea.sflag [#allocation3], %s675_s16 }
 0x2e8   : > { %p829_p2 = pnand %p832_p1, %p1020_p6 }
 0x2ea   : > { %915 = dma.done.wait (!%p829_p2), %s676_s17, 128  }
 0x2eb   : > { %917 = vsyncadd (!%p829_p2), %s676_s17, 4294967168  ;;  %p17_p3 = scmp.ge.s32.totalorder %s1003_s30, 4   ;;  %s1118_s24 = smov %s924_s25 }
 0x2ec   : > { %s1119_s25 = smov %s928_s26  ;;  %s1120_s26 = smov %s1014_s10 }
 0x2ed   : > { %s1121_s27 = smov %s1003_s30  ;;  %19 = sbr.rel (!%p17_p3) target bundleno = 3 (0x3), region = 95 }
 0x2f4   :  { %681 = vsyncpa [#allocation3], 1 }
 0x2f5   :  { %683 = vsyncpa [#allocation3 + $0x1], 1 }

</bundles_post_ra>
